<compile_context>
chip_gen: v7x
topology: tpu7x:2x2x1
jax: 0.10.0
libtpu: 0.0.40
codegen_flags: <defaults>
</compile_context>

<pallas_src>
import functools

import jax
import jax.numpy as jnp
from jax import lax
from jax.experimental import pallas as pl
from jax.experimental.pallas import tpu as pltpu

# Contract minor dim of LHS with minor dim of RHS (the flash-attention
# "q @ k^T" pattern): (H, D) x (Bt, D) -> (H, Bt).
_NT_DIM_NUMBERS = (((1,), (1,)), ((), ()))


def critic_kernel(x_ref, w1_ref, b1_ref, w2_ref, b2_ref, w3_ref, b3_ref, qT_ref):
    """Whole-trunk MLP for one batch tile; batch lives on lanes in-kernel."""
    x = x_ref[...]                                              # (Bt, D) natural layout

    # Layer 1: contract feature dims directly -> (H, Bt), then bias + ReLU.
    h = lax.dot_general(w1_ref[...], x, _NT_DIM_NUMBERS,
                        preferred_element_type=jnp.float32) + b1_ref[...]
    h = jnp.maximum(h, 0.0)

    # Layer 2: (H, H) @ (H, Bt) + (H, 1) -> ReLU.
    h = jnp.dot(w2_ref[...], h, preferred_element_type=jnp.float32) + b2_ref[...]
    h = jnp.maximum(h, 0.0)

    # Output layer: (1, H) @ (H, Bt) + scalar bias -> lane-dense (1, Bt).
    q = jnp.dot(w3_ref[...], h, preferred_element_type=jnp.float32) + b3_ref[0, 0]
    qT_ref[...] = q.astype(qT_ref.dtype)


def _pick_block_b(B: int, target: int = 2048) -> int:
    """Largest lane-friendly batch tile; keeps >=2 grid steps when possible."""
    if B % 128 != 0:
        return B                       # small / ragged batch: single full tile
    bb = min(target, B)
    while bb > 128 and (B % bb != 0 or B // bb < 2):
        bb -= 128
    return bb if B % bb == 0 else B


@functools.partial(jax.jit, static_argnames=("block_b",))
def _critic_forward_impl(x, w1, b1, w2, b2, w3, b3, *, block_b):
    B, D = x.shape
    H = w1.shape[0]
    assert B % block_b == 0, "batch must be divisible by the batch tile"

    grid = (B // block_b,)

    qT = pl.pallas_call(
        critic_kernel,
        out_shape=jax.ShapeDtypeStruct((1, B), jnp.float32),
        grid_spec=pltpu.PrefetchScalarGridSpec(
            num_scalar_prefetch=0,
            grid=grid,
            in_specs=[
                pl.BlockSpec((block_b, D), lambda i: (i, 0)),   # x tile (native layout)
                pl.BlockSpec((H, D), lambda i: (0, 0)),         # W1 (resident)
                pl.BlockSpec((H, 1), lambda i: (0, 0)),         # b1 (column)
                pl.BlockSpec((H, H), lambda i: (0, 0)),         # W2
                pl.BlockSpec((H, 1), lambda i: (0, 0)),         # b2
                pl.BlockSpec((1, H), lambda i: (0, 0)),         # W3
                pl.BlockSpec(memory_space=pltpu.MemorySpace.SMEM),  # b3 scalar
            ],
            out_specs=pl.BlockSpec((1, block_b), lambda i: (0, i)),  # lane-dense q^T
        ),
        compiler_params=pltpu.CompilerParams(
            dimension_semantics=("parallel",),
        ),
    )(x, w1, b1, w2, b2, w3, b3)

    return qT.reshape(B, 1)   # free bitcast reshape to the module contract [B, 1]


def critic_forward(x, w1, b1, w2, b2, w3, b3, block_b=None):
    """Forward pass of AbstractCritic: q = trunk(observation_action), q: [B, 1]."""
    B = x.shape[0]
    if block_b is None:
        block_b = _pick_block_b(B)
    return _critic_forward_impl(x, w1, b1, w2, b2, w3, b3, block_b=block_b)


def init_linear(key, fan_in, fan_out):
    """torch.nn.Linear-style init; weights in torch convention (out, in)."""
    kw, kb = jax.random.split(key)
    bound = 1.0 / jnp.sqrt(jnp.float32(fan_in))
    w = jax.random.uniform(kw, (fan_out, fan_in), jnp.float32, -bound, bound)
    b = jax.random.uniform(kb, (fan_out, 1), jnp.float32, -bound, bound)
    return w, b


def reference_forward(x, w1, b1, w2, b2, w3, b3):
    h = jnp.maximum(x @ w1.T + b1.reshape(1, -1), 0.0)
    h = jnp.maximum(h @ w2.T + b2.reshape(1, -1), 0.0)
    return h @ w3.T + b3.reshape(1, 1)


if __name__ == "__main__":
    # Small shapes consistent with the module's forward.
    observation_length = 12
    action_length = 4
    hidden_dimension = 32
    batch = 16

    in_dim = observation_length + action_length  # 16

    key = jax.random.PRNGKey(0)
    kx, k1, k2, k3 = jax.random.split(key, 4)

    # observation_action: [batch, observation_length + action_length]
    x = jax.random.normal(kx, (batch, in_dim), jnp.float32)

    w1, b1 = init_linear(k1, in_dim, hidden_dimension)
    w2, b2 = init_linear(k2, hidden_dimension, hidden_dimension)
    w3, b3 = init_linear(k3, hidden_dimension, 1)

    q = critic_forward(x, w1, b1, w2, b2, w3, b3)
    q = jax.block_until_ready(q)

    q_ref = reference_forward(x, w1, b1, w2, b2, w3, b3)
    assert q.shape == (batch, 1)
    assert jnp.allclose(q, q_ref, atol=1e-4, rtol=1e-4)

    print("KERNEL_OK")
</pallas_src>

<mosaic_0001>
module attributes {stable_mosaic.version = 11 : i64} {
  func.func @critic_kernel(%arg0: i32, %arg1: memref<16x16xf32, #tpu.memory_space<vmem>>, %arg2: memref<32x16xf32, #tpu.memory_space<vmem>>, %arg3: memref<32x1xf32, #tpu.memory_space<vmem>>, %arg4: memref<32x32xf32, #tpu.memory_space<vmem>>, %arg5: memref<32x1xf32, #tpu.memory_space<vmem>>, %arg6: memref<1x32xf32, #tpu.memory_space<vmem>>, %arg7: memref<1x1xf32, #tpu.memory_space<smem>>, %arg8: memref<1x16xf32, #tpu.memory_space<vmem>>) attributes {dimension_semantics = [#tpu.dimension_semantics<parallel>], iteration_bounds = array<i64: 1>, scalar_prefetch = 0 : i64, scratch_operands = 0 : i64, tpu.core_type = #tpu.core_type<tc>, window_params = [{transform_indices = @transform_0, window_bounds = array<i64: 16, 16>}, {pipeline_mode = #tpu.pipeline_mode<synchronous>, transform_indices = @transform_1, window_bounds = array<i64: 32, 16>}, {pipeline_mode = #tpu.pipeline_mode<synchronous>, transform_indices = @transform_2, window_bounds = array<i64: 32, 1>}, {pipeline_mode = #tpu.pipeline_mode<synchronous>, transform_indices = @transform_3, window_bounds = array<i64: 32, 32>}, {pipeline_mode = #tpu.pipeline_mode<synchronous>, transform_indices = @transform_4, window_bounds = array<i64: 32, 1>}, {pipeline_mode = #tpu.pipeline_mode<synchronous>, transform_indices = @transform_5, window_bounds = array<i64: 1, 32>}, {transform_indices = @transform_6, window_bounds = array<i64: 1, 1>}, {transform_indices = @transform_7, window_bounds = array<i64: 1, 16>}]} {
    %c0 = arith.constant 0 : index
    %c0_0 = arith.constant 0 : index
    %0 = vector.load %arg1[%c0, %c0_0] : memref<16x16xf32, #tpu.memory_space<vmem>>, vector<16x16xf32>
    %c0_1 = arith.constant 0 : index
    %c0_2 = arith.constant 0 : index
    %1 = vector.load %arg2[%c0_1, %c0_2] : memref<32x16xf32, #tpu.memory_space<vmem>>, vector<32x16xf32>
    %cst = arith.constant dense<0.000000e+00> : vector<32x16xf32>
    %2 = tpu.matmul %1, %0, %cst {dimension_numbers = #tpu.dot_dimension_numbers<[1], [1], [0], [0], [0, 0, 1, 0], [], []>} : vector<32x16xf32>, vector<16x16xf32>, vector<32x16xf32> -> vector<32x16xf32>
    %c0_3 = arith.constant 0 : index
    %c0_4 = arith.constant 0 : index
    %3 = vector.load %arg3[%c0_3, %c0_4] : memref<32x1xf32, #tpu.memory_space<vmem>>, vector<32x1xf32>
    %4 = vector.broadcast %3 : vector<32x1xf32> to vector<32x16xf32>
    %5 = arith.addf %2, %4 : vector<32x16xf32>
    %cst_5 = arith.constant 0.000000e+00 : f32
    %6 = vector.broadcast %cst_5 : f32 to vector<32x16xf32>
    %7 = arith.maximumf %5, %6 : vector<32x16xf32>
    %c0_6 = arith.constant 0 : index
    %c0_7 = arith.constant 0 : index
    %8 = vector.load %arg4[%c0_6, %c0_7] : memref<32x32xf32, #tpu.memory_space<vmem>>, vector<32x32xf32>
    %cst_8 = arith.constant dense<0.000000e+00> : vector<32x16xf32>
    %9 = tpu.matmul %8, %7, %cst_8 {dimension_numbers = #tpu.dot_dimension_numbers<[1], [0], [0], [1], [0, 0, 1, 1], [], []>} : vector<32x32xf32>, vector<32x16xf32>, vector<32x16xf32> -> vector<32x16xf32>
    %c0_9 = arith.constant 0 : index
    %c0_10 = arith.constant 0 : index
    %10 = vector.load %arg5[%c0_9, %c0_10] : memref<32x1xf32, #tpu.memory_space<vmem>>, vector<32x1xf32>
    %11 = vector.broadcast %10 : vector<32x1xf32> to vector<32x16xf32>
    %12 = arith.addf %9, %11 : vector<32x16xf32>
    %cst_11 = arith.constant 0.000000e+00 : f32
    %13 = vector.broadcast %cst_11 : f32 to vector<32x16xf32>
    %14 = arith.maximumf %12, %13 : vector<32x16xf32>
    %c0_12 = arith.constant 0 : index
    %c0_13 = arith.constant 0 : index
    %15 = vector.load %arg6[%c0_12, %c0_13] : memref<1x32xf32, #tpu.memory_space<vmem>>, vector<1x32xf32>
    %cst_14 = arith.constant dense<0.000000e+00> : vector<1x16xf32>
    %16 = tpu.matmul %15, %14, %cst_14 {dimension_numbers = #tpu.dot_dimension_numbers<[1], [0], [0], [1], [0, 0, 1, 1], [], []>} : vector<1x32xf32>, vector<32x16xf32>, vector<1x16xf32> -> vector<1x16xf32>
    %c0_15 = arith.constant 0 : index
    %c0_16 = arith.constant 0 : index
    %17 = memref.load %arg7[%c0_15, %c0_16] : memref<1x1xf32, #tpu.memory_space<smem>>
    %18 = vector.broadcast %17 : f32 to vector<1x16xf32>
    %19 = arith.addf %16, %18 : vector<1x16xf32>
    %c0_17 = arith.constant 0 : index
    %c0_18 = arith.constant 0 : index
    %20 = vector.load %arg8[%c0_17, %c0_18] : memref<1x16xf32, #tpu.memory_space<vmem>>, vector<1x16xf32>
    tpu.vector_store %arg8[%c0_17, %c0_18], %19 {strides = array<i32>} : memref<1x16xf32, #tpu.memory_space<vmem>>, vector<1x16xf32>,
    return
  }
  func.func @transform_0(%arg0: i32) -> (i32, i32) {
    %c0_i32 = arith.constant 0 : i32
    %c0_i32_0 = arith.constant 0 : i32
    return %arg0, %c0_i32 : i32, i32
  }
  func.func @transform_1(%arg0: i32) -> (i32, i32) {
    %c0_i32 = arith.constant 0 : i32
    %c0_i32_0 = arith.constant 0 : i32
    %c0_i32_1 = arith.constant 0 : i32
    return %c0_i32, %c0_i32_0 : i32, i32
  }
  func.func @transform_2(%arg0: i32) -> (i32, i32) {
    %c0_i32 = arith.constant 0 : i32
    %c0_i32_0 = arith.constant 0 : i32
    %c0_i32_1 = arith.constant 0 : i32
    return %c0_i32, %c0_i32_0 : i32, i32
  }
  func.func @transform_3(%arg0: i32) -> (i32, i32) {
    %c0_i32 = arith.constant 0 : i32
    %c0_i32_0 = arith.constant 0 : i32
    %c0_i32_1 = arith.constant 0 : i32
    return %c0_i32, %c0_i32_0 : i32, i32
  }
  func.func @transform_4(%arg0: i32) -> (i32, i32) {
    %c0_i32 = arith.constant 0 : i32
    %c0_i32_0 = arith.constant 0 : i32
    %c0_i32_1 = arith.constant 0 : i32
    return %c0_i32, %c0_i32_0 : i32, i32
  }
  func.func @transform_5(%arg0: i32) -> (i32, i32) {
    %c0_i32 = arith.constant 0 : i32
    %c0_i32_0 = arith.constant 0 : i32
    %c0_i32_1 = arith.constant 0 : i32
    return %c0_i32, %c0_i32_0 : i32, i32
  }
  func.func @transform_6(%arg0: i32) -> (i32, i32) {
    %c0_i32 = arith.constant 0 : i32
    %c0_i32_0 = arith.constant 0 : i32
    %c0_i32_1 = arith.constant 0 : i32
    return %c0_i32, %c0_i32_0 : i32, i32
  }
  func.func @transform_7(%arg0: i32) -> (i32, i32) {
    %c0_i32 = arith.constant 0 : i32
    %c0_i32_0 = arith.constant 0 : i32
    return %c0_i32, %arg0 : i32, i32
  }
}

</mosaic_0001>

<bundles_post_ra>
// kernel: _critic_forward_impl.1
= control target key start
LH: loop header
LB: loop body
LE: loop exit
PB: predicated region body
PF: predicated region fallthrough
CT: control target
= control target key end

     0   :  { %vm58_vm0 = vcmask 130048   ;;  %v504_v4 = vmov 0   ;;  %s632_s0 = inlined_call_operand.vmem [shape: f32[16,16], index: 0, kind: input, shape index: {}]   ;;  %s633_s1 = inlined_call_operand.vmem [shape: f32[32,16], index: 1, kind: input, shape index: {}]   ;;  %s634_s2 = inlined_call_operand.vmem [shape: f32[32,1], index: 2, kind: input, shape index: {}]   ;;  %s635_s3 = inlined_call_operand.vmem [shape: f32[32,32], index: 3, kind: input, shape index: {}]   ;;  %s636_s4 = inlined_call_operand.vmem [shape: f32[32,1], index: 4, kind: input, shape index: {}]   ;;  %s637_s5 = inlined_call_operand.vmem [shape: f32[1,32], index: 5, kind: input, shape index: {}]   ;;  %s638_s6 = inlined_call_operand.<no memory space> [shape: f32[1,1], index: 6, kind: input, shape index: {}]   ;;  %s639_s7 = inlined_call_operand.hbm [shape: f32[1,16], index: 7, kind: output, shape index: {}]  }
   0x1   :  { %v28_v0 = vld [vmem:[%s632_s0] sm:$0xff]  ;;  %v29_v1 = vld [vmem:[%s632_s0 + $0x8] sm:$0xff]  ;;  %vm454_vm1 = vmpackc.low %vm58_vm0, %vm58_vm0  ;;  %478 = vset.pattern.permute.xlu0 %v504_v4  ;;  %479 = vset.pattern.permute.xlu1 %v504_v4 }
   0x2   :  { %v30_v2 = vld [vmem:[%s633_s1] sm:$0xff]  ;;  %v453_v3 = vpack.c.bf16 %v29_v1, %v28_v0  ;;  %v36_v6 = vld [vmem:[%s634_s2 + $0x10] sm:$0xff]  ;;  %v35_v7 = vld [vmem:[%s634_s2 + $0x8] sm:$0xff] }
   0x3   :  { %422 = vmatprep.mubr.msk.f32.mxu0 %vm58_vm0, %v30_v2  ;;  %v34_v5 = vld [vmem:[%s634_s2] sm:$0xff]  ;;  %50 = vperm.xlu1 %479, %v36_v6   ;;  %v37_v8 = vld [vmem:[%s634_s2 + $0x18] sm:$0xff] }
   0x4   :  { %455 = vmatprep.subr.msk.bf16.mxu0 %vm454_vm1, %v453_v3  ;;  %40 = vperm.xlu0 %478, %v34_v5  }
   0x5   :  { %458 = vmatpush3.bf16.xpose.msk.msra.mxu0 %vm454_vm1, %v453_v3 }
   0x6   :  { %13 = vsyncpa [#allocation4], 0  ;;  %v31_v9 = vld [vmem:[%s633_s1 + $0x8] sm:$0xff]  ;;  %v170_v10 = vld [vmem:[%s636_s4] sm:$0xff]  ;;  %vm194_vm2 = vcmask 261120   ;;  %v505_v38 = vmov 0.0|0.0   ;;  %v298_v59 = vstv %s638_s6 }
   0x7   :  { %55 = vperm.xlu1 %479, %v37_v8   ;;  %v32_v11 = vld [vmem:[%s633_s1 + $0x10] sm:$0xff]  ;;  %v171_v12 = vld [vmem:[%s636_s4 + $0x8] sm:$0xff]  ;;  %v33_v13 = vld [vmem:[%s633_s1 + $0x18] sm:$0xff]  ;;  %467 = vmatprep.subr.bf16.mxu0 %v505_v38  ;;  %vm506_vm3 = vmmov 0   ;;  %v507_v39 = vmov 0.0   ;;  %s508_s12 = smov [#allocation3]  }
   0x8   :  { %45 = vperm.xlu0 %478, %v35_v7   ;;  %v172_v14 = vld [vmem:[%s636_s4 + $0x10] sm:$0xff]  ;;  %v173_v15 = vld [vmem:[%s636_s4 + $0x18] sm:$0xff]  ;;  %v166_v16 = vld [vmem:[%s635_s3] sm:$0xff]  ;;  %s380_s13 = sshll.u32 %s508_s12, 4  ;;  %vm372_vm4 = vcmask 122880   ;;  %s381_s13 = int_to_ptr.vmem [resolvable:$true] %s380_s13 }
   0x9   :  { %436 = vmatprep.mubr.msk.f32.mxu1 %vm194_vm2, %v166_v16  ;;  %v167_v35 = vld [vmem:[%s635_s3 + $0x8] sm:$0xff]  ;;  %v168_v36 = vld [vmem:[%s635_s3 + $0x10] sm:$0xff]  ;;  %v169_v37 = vld [vmem:[%s635_s3 + $0x18] sm:$0xff]  ;;  %s480_s14 = scalar_lea.vmem %s381_s13, 16  ;;  %s484_s15 = scalar_lea.vmem %s381_s13, 32 }
   0xa   :  { %v296_v58 = vld [vmem:[%s637_s5] sm:$0x1]  ;;  %p481_p0 = scmp.ne.s32.totalorder %s381_s13, %s480_s14  ;;  %p485_p1 = scmp.lt.s32.totalorder %s381_s13, %s381_s13 }
   0xb   :  { %181 = vperm.xlu1 %479, %v171_v12   ;;  %p486_p2 = scmp.lt.s32.totalorder %s484_s15, %s480_s14 }
   0xc   :  { %423 = vmatmul.mubr.msk.f32.vlgmr.msra.gmra.mrb[0].mxu0 %vm58_vm0, %v31_v9  ;;  %176 = vperm.xlu0 %478, %v170_v10  }
   0xd   :  { %425 = vmatprep.mubr.msk.f32.mxu0 %vm58_vm0, %v32_v11  ;;  %p487_p3 = por %p486_p2, %p485_p1 }
   0xf   :  { %191 = vperm.xlu1 %479, %v173_v15   ;;  %p488_p4 = pnand %p487_p3, %p481_p0 }
  0x10   :  { %426 = vmatmul.mubr.msk.f32.gmra.mrb[2].mxu0 %vm58_vm0, %v33_v13  ;;  %186 = vperm.xlu0 %478, %v172_v14  }
  0x11   :  { %450 = vmatprep.mubr.msk.f32.mxu0 %vm506_vm3, %v507_v39 }
  0x82   :  { %v51_v18 = vpop.permute.xlu1 %50 }
  0x83   :  { %v41_v17 = vpop.permute.xlu0 %40 }
  0x86   :  { %v56_v25 = vpop.permute.xlu1 %55 }
  0x87   :  { %v46_v19 = vpop.permute.xlu0 %45 }
  0x8a   :  { %v182_v40 = vpop.permute.xlu1 %181 }
  0x8b   :  { %v177_v41 = vpop.permute.xlu0 %176 }
  0x8e   :  { %v192_v47 = vpop.permute.xlu1 %191 }
  0x8f   :  { %v187_v50 = vpop.permute.xlu0 %186 }
  0xdf   :  { %v424_v20 = vpop.f32.mrb[0].mxu0 }
  0xe0   :  { %v149_v21 = vadd.f32 %v424_v20, %v46_v19  ;;  %v143_v22 = vpop.f32.mrb[1].mxu0 }
  0xe1   :  { %v144_v23 = vadd.f32 %v143_v22, %v41_v17 }
  0xe2   :  { %v163_v24 = vmax.f32 %v149_v21, 0.0 }
  0xe3   :  { %v162_v26 = vmax.f32 %v144_v23, 0.0  ;;  %v427_v27 = vpop.f32.mrb[2].mxu0 }
  0xe4   :  { %v159_v28 = vadd.f32 %v427_v27, %v56_v25  ;;  %v153_v29 = vpop.f32.mrb[3].mxu0 }
  0xe5   :  { %v154_v30 = vadd.f32 %v153_v29, %v51_v18  ;;  %v459_v31 = vpack.c.bf16 %v163_v24, %v162_v26 }
  0xe6   :  { %v165_v32 = vmax.f32 %v159_v28, 0.0 }
  0xe7   :  { %v164_v33 = vmax.f32 %v154_v30, 0.0  ;;  %460 = vmatprep.subr.bf16.mxu1 %v459_v31 }
  0xe8   :  { %462 = vmatpush3.bf16.msra.mxu1 %v459_v31 }
  0xe9   :  { %v463_v34 = vpack.c.bf16 %v165_v32, %v164_v33 }
  0xeb   :  { %464 = vmatprep.subr.bf16.mxu1 %v463_v34 }
  0xec   :  { %466 = vmatpush3.bf16.msra.mxu1 %v463_v34 }
  0xef   :  { %437 = vmatmul.mubr.msk.f32.vlgmr.msra.gmra.mrb[0].mxu1 %vm194_vm2, %v167_v35 }
  0xf0   :  { %439 = vmatprep.mubr.msk.f32.mxu1 %vm194_vm2, %v168_v36 }
  0xf3   :  { %440 = vmatmul.mubr.msk.f32.gmra.mrb[2].mxu1 %vm194_vm2, %v169_v37 }
 0x1c2   :  { %v438_v42 = vpop.f32.mrb[0].mxu1 }
 0x1c3   :  { %v279_v43 = vadd.f32 %v438_v42, %v182_v40  ;;  %v273_v44 = vpop.f32.mrb[1].mxu1 }
 0x1c4   :  { %v274_v45 = vadd.f32 %v273_v44, %v177_v41 }
 0x1c5   :  { %v293_v46 = vmax.f32 %v279_v43, 0.0 }
 0x1c6   :  { %v292_v48 = vmax.f32 %v274_v45, 0.0  ;;  %v441_v49 = vpop.f32.mrb[2].mxu1 }
 0x1c7   :  { %v289_v51 = vadd.f32 %v441_v49, %v192_v47  ;;  %v283_v52 = vpop.f32.mrb[3].mxu1 }
 0x1c8   :  { %v468_v53 = vpack.c.bf16 %v293_v46, %v292_v48  ;;  %v284_v54 = vadd.f32 %v283_v52, %v187_v50 }
 0x1c9   :  { %v295_v55 = vmax.f32 %v289_v51, 0.0 }
 0x1ca   :  { %v294_v56 = vmax.f32 %v284_v54, 0.0  ;;  %469 = vmatpush3.bf16.msra.mxu0 %v468_v53 }
 0x1cb   :  { %470 = vmatprep.subr.bf16.mxu0 %v505_v38 }
 0x1cc   :  { %v471_v57 = vpack.c.bf16 %v295_v55, %v294_v56 }
 0x1ce   :  { %472 = vmatpush3.bf16.msra.mxu0 %v471_v57 }
 0x1d1   :  { %451 = vmatmul.mubr.msk.f32.vlgmr.msra.gmra.mrb[4].mxu0 %vm194_vm2, %v296_v58 }
 0x2a4   :  { %v368_v60 = vpop.f32.mrb[4].mxu0 }
 0x2a5   :  { %v369_v61 = vadd.f32 %v368_v60, %v298_v59  ;;  %v452_v62 = vpop.f32.mrb[5].mxu0 }
 0x2a7   :  { %373 = vst.msk [vmem:[#allocation3] sm:$0x1] %vm372_vm4, %v369_v61 }
 0x2a8   :  { %491 = shalt.err (!%p488_p4)
}
 0x2a9   :  { %s492_s6 = scalar_lea.hbm %s639_s7, 16 }
 0x2aa   :  { %p493_p5 = scmp.ne.s32.totalorder %s639_s7, %s492_s6  ;;  %p496_p6 = scmp.lt.u32.totalorder %s492_s6, %s639_s7 }
 0x2ac   :  { %p498_p7 = pnand %p496_p6, %p493_p5 }
 0x2ae   :  { %501 = shalt.err (!%p498_p7)
}
 0x2af   :  { %383 = dma.vmem_to_hbm [thread:$0]  %s381_s13, 16, %s639_s7, [#allocation4]  }
 0x2b0   :  { %502 = dma.done.wait [#allocation4], 16  }
 0x2b1   :  { %503 = vsyncadd [#allocation4], 4294967280 }
 0x2b2   :  { %387 = vsyncpa [#allocation4], 1 }

</bundles_post_ra>
